<compile_context>
chip_gen: v5e
topology: v5e:2x2
jax: 0.10.0
libtpu: 0.0.40
codegen_flags: <defaults>
</compile_context>

<pallas_src>
import math
import functools

import jax
import jax.numpy as jnp
from jax import lax
from jax.experimental import pallas as pl
from jax.experimental.pallas import tpu as pltpu


_MASK_VALUE = -1e30  # finite "minus infinity": avoids inf-inf -> NaN hazards


# ------------------------------ tiling helpers ------------------------------


def _pick_tile(dim, preferred, align):
    """Largest tile <= preferred that divides `dim` and is a multiple of `align`;
    falls back to the full dim (full-extent blocks are always legal)."""
    if dim <= preferred:
        return dim
    t = (preferred // align) * align
    while t >= align:
        if dim % t == 0:
            return t
        t -= align
    return dim


def _pick_group(bh, max_group=8):
    """Number of (batch*head) slices processed per grid step (batched einsum)."""
    g = min(bh, max_group)
    while bh % g != 0:
        g -= 1
    return g


# --------------------------- tiled GEMM (+bias) kernel -----------------------


def _matmul_bias_kernel(x_ref, wt_ref, b_ref, o_ref, acc_ref):
    # y = x @ W^T + b, with W pre-transposed in the wrapper (no in-kernel .T).
    k_idx = pl.program_id(2)

    @pl.when(k_idx == 0)
    def _init():
        acc_ref[...] = jnp.zeros_like(acc_ref)

    acc_ref[...] += jnp.dot(
        x_ref[...], wt_ref[...], preferred_element_type=jnp.float32
    )

    @pl.when(k_idx == pl.num_programs(2) - 1)
    def _finish():
        o_ref[...] = (acc_ref[...] + b_ref[...].astype(jnp.float32)).astype(o_ref.dtype)


def pallas_linear(x2d, w, b, *, tm=256, tn=256, tk=512):
    """x2d: [M, K]; w: [out, K] (PyTorch nn.Linear layout); b: [out] -> [M, out].

    Tile sizes (default 256x256x512 f32) keep double-buffered inputs + accumulator
    well under the scoped-VMEM default on every generation (incl. v7x's 64 MiB)."""
    m, kdim = x2d.shape
    out_dim = w.shape[0]
    w_t = jnp.transpose(w)          # one-time weight transpose in the wrapper
    b2d = b.reshape(1, out_dim)

    tm = _pick_tile(m, tm, 8)
    tn = _pick_tile(out_dim, tn, 128)
    tk = _pick_tile(kdim, tk, 128)
    grid = (m // tm, out_dim // tn, kdim // tk)

    return pl.pallas_call(
        _matmul_bias_kernel,
        out_shape=jax.ShapeDtypeStruct((m, out_dim), x2d.dtype),
        grid_spec=pltpu.PrefetchScalarGridSpec(
            num_scalar_prefetch=0,
            grid=grid,
            in_specs=[
                pl.BlockSpec((tm, tk), lambda i, j, k: (i, k)),
                pl.BlockSpec((tk, tn), lambda i, j, k: (k, j)),
                pl.BlockSpec((1, tn), lambda i, j, k: (0, j)),
            ],
            out_specs=pl.BlockSpec((tm, tn), lambda i, j, k: (i, j)),
            scratch_shapes=[pltpu.VMEM((tm, tn), jnp.float32)],
        ),
        compiler_params=pltpu.CompilerParams(
            dimension_semantics=("parallel", "parallel", "arbitrary")
        ),
    )(x2d, w_t, b2d)


# ----------------------- flash-style causal attention ------------------------


def _attn_tile_update(q, k, v, m_sc, l_sc, acc_sc, scale, mask):
    """One online-softmax update. q/k/v: [G, t, d_k]; mask: [1, tq, tk] or None."""
    # Contract the last axes directly (no in-kernel .T).
    s = jnp.einsum("gqd,gkd->gqk", q, k, preferred_element_type=jnp.float32) * scale
    if mask is not None:
        s = jnp.where(mask, _MASK_VALUE, s)

    m_prev = m_sc[...]
    m_new = jnp.maximum(m_prev, jnp.max(s, axis=-1, keepdims=True))
    alpha = jnp.exp(m_prev - m_new)
    p = jnp.exp(s - m_new)
    if mask is not None:
        # Robust against rows whose entries are all masked in this tile.
        p = jnp.where(mask, 0.0, p)

    l_sc[...] = alpha * l_sc[...] + jnp.sum(p, axis=-1, keepdims=True)
    acc_sc[...] = alpha * acc_sc[...] + jnp.einsum(
        "gqk,gkd->gqd", p.astype(v.dtype), v, preferred_element_type=jnp.float32
    )
    m_sc[...] = m_new


def _flash_attn_kernel(q_ref, k_ref, v_ref, o_ref, m_sc, l_sc, acc_sc, *, scale, tq, tk):
    qi = pl.program_id(1)
    ki = pl.program_id(2)

    @pl.when(ki == 0)
    def _init():
        m_sc[...] = jnp.full_like(m_sc, _MASK_VALUE)
        l_sc[...] = jnp.zeros_like(l_sc)
        acc_sc[...] = jnp.zeros_like(acc_sc)

    q_start = qi * tq
    k_start = ki * tk
    # Causal: tile is relevant only if it contains some (row >= col).
    below_diag = k_start <= q_start + (tq - 1)
    # Mask work only needed if the tile contains some (col > row).
    crosses_diag = (k_start + (tk - 1)) > q_start

    @pl.when(jnp.logical_and(below_diag, crosses_diag))
    def _masked_tile():
        row = q_start + lax.broadcasted_iota(jnp.int32, (tq, tk), 0)
        col = k_start + lax.broadcasted_iota(jnp.int32, (tq, tk), 1)
        mask = (col > row)[None, :, :]
        _attn_tile_update(q_ref[...], k_ref[...], v_ref[...], m_sc, l_sc, acc_sc,
                          scale, mask)

    @pl.when(jnp.logical_and(below_diag, jnp.logical_not(crosses_diag)))
    def _interior_tile():
        _attn_tile_update(q_ref[...], k_ref[...], v_ref[...], m_sc, l_sc, acc_sc,
                          scale, None)

    @pl.when(ki == pl.num_programs(2) - 1)
    def _finish():
        inv = pl.reciprocal(l_sc[...], approx=True)   # EUP reciprocal, off the VALU
        o_ref[...] = (acc_sc[...] * inv).astype(o_ref.dtype)


def pallas_flash_causal_attention(q, k, v, d_k, *, tq=128, tk=128, max_group=8):
    """q, k, v: [B*H, S, d_k] -> [B*H, S, d_k], causal softmax attention."""
    bh, s, dk = q.shape
    scale = 1.0 / math.sqrt(d_k)

    g = _pick_group(bh, max_group)   # several (batch, head) slices per grid step
    tq = _pick_tile(s, tq, 8)
    tk = _pick_tile(s, tk, 8)
    grid = (bh // g, s // tq, s // tk)

    kernel = functools.partial(_flash_attn_kernel, scale=scale, tq=tq, tk=tk)

    q_spec = pl.BlockSpec((g, tq, dk), lambda b, i, j: (b, i, 0))
    kv_spec = pl.BlockSpec((g, tk, dk), lambda b, i, j: (b, j, 0))
    out_spec = pl.BlockSpec((g, tq, dk), lambda b, i, j: (b, i, 0))

    return pl.pallas_call(
        kernel,
        out_shape=jax.ShapeDtypeStruct((bh, s, dk), q.dtype),
        grid_spec=pltpu.PrefetchScalarGridSpec(
            num_scalar_prefetch=0,
            grid=grid,
            in_specs=[q_spec, kv_spec, kv_spec],
            out_specs=out_spec,
            scratch_shapes=[
                pltpu.VMEM((g, tq, 1), jnp.float32),   # m (running max)
                pltpu.VMEM((g, tq, 1), jnp.float32),   # l (running denom)
                pltpu.VMEM((g, tq, dk), jnp.float32),  # acc
            ],
        ),
        compiler_params=pltpu.CompilerParams(
            dimension_semantics=("parallel", "parallel", "arbitrary")
        ),
    )(q, k, v)


# ----------------------------- module forward glue ---------------------------


def init_mha_params(key, d_model):
    """nn.Linear-style init: U(-1/sqrt(in), 1/sqrt(in))."""
    bound = 1.0 / math.sqrt(d_model)
    keys = jax.random.split(key, 8)

    def lin(kw, kb):
        w = jax.random.uniform(kw, (d_model, d_model), jnp.float32, -bound, bound)
        b = jax.random.uniform(kb, (d_model,), jnp.float32, -bound, bound)
        return w, b

    return {
        "q": lin(keys[0], keys[1]),
        "k": lin(keys[2], keys[3]),
        "v": lin(keys[4], keys[5]),
        "out": lin(keys[6], keys[7]),
    }


def multi_head_attention_forward(params, x, num_heads):
    """Mirrors MultiHeadAttention.forward (use_memory path is identity on the first
    call since KNNMemory buffers start empty)."""
    batch_size, seq_len, d_model = x.shape
    d_k = d_model // num_heads
    n = batch_size * seq_len

    x2d = x.reshape(n, d_model)

    # Fused QKV projection: one GEMM reads x once (3x fewer activation reads,
    # lane-dense 3*d_model output).
    w_qkv = jnp.concatenate(
        [params["q"][0], params["k"][0], params["v"][0]], axis=0)   # [3*dm, dm]
    b_qkv = jnp.concatenate(
        [params["q"][1], params["k"][1], params["v"][1]], axis=0)   # [3*dm]
    qkv = pallas_linear(x2d, w_qkv, b_qkv)                          # [n, 3*dm]

    q2d = qkv[:, 0:d_model]
    k2d = qkv[:, d_model:2 * d_model]
    v2d = qkv[:, 2 * d_model:3 * d_model]

    def to_heads(t2d):
        # [B*S, dm] -> [B, H, S, d_k] -> [B*H, S, d_k]  (bh = b*H + h, as the
        # PyTorch .view on the contiguous [B, H, S, d_k] tensor)
        return (t2d.reshape(batch_size, seq_len, num_heads, d_k)
                   .transpose(0, 2, 1, 3)
                   .reshape(batch_size * num_heads, seq_len, d_k))

    # TODO(synk): fold these (b, h) transposes into the attention BlockSpec index_map
    #             to save the extra HBM passes over the activations.
    q_r, k_r, v_r = to_heads(q2d), to_heads(k2d), to_heads(v2d)

    attn_out = pallas_flash_causal_attention(q_r, k_r, v_r, d_k)    # [B*H, S, d_k]

    # Reproduce the PyTorch module's exact head-major reinterpretation:
    #   attn_out.view(H, B, S, d_k).permute(1, 0, 2, 3) followed by
    #   .permute(0, 2, 1, 3).view(B, S, H*d_k)
    attn_out = attn_out.reshape(num_heads, batch_size, seq_len, d_k)
    out2d = jnp.transpose(attn_out, (1, 2, 0, 3)).reshape(n, d_model)

    # memory branch is identity on the first call (empty memory); dropout is identity.
    out = pallas_linear(out2d, *params["out"])
    return out.reshape(batch_size, seq_len, d_model)


# ------------------------------------ main -----------------------------------

if __name__ == "__main__":
    batch_size = 2
    seq_len = 8
    d_model = 32
    num_heads = 4

    key = jax.random.PRNGKey(0)
    k_x, k_p = jax.random.split(key)
    x = jax.random.normal(k_x, (batch_size, seq_len, d_model), dtype=jnp.float32)
    params = init_mha_params(k_p, d_model)

    out = multi_head_attention_forward(params, x, num_heads)
    out = jax.block_until_ready(out)
    assert out.shape == (batch_size, seq_len, d_model)
    assert bool(jnp.all(jnp.isfinite(out)))
    print("KERNEL_OK")
</pallas_src>

<mosaic_0001>
module attributes {stable_mosaic.version = 11 : i64} {
  func.func @_matmul_bias_kernel(%arg0: i32, %arg1: i32, %arg2: i32, %arg3: memref<16x32xf32, #tpu.memory_space<vmem>>, %arg4: memref<32x96xf32, #tpu.memory_space<vmem>>, %arg5: memref<1x96xf32, #tpu.memory_space<vmem>>, %arg6: memref<16x96xf32, #tpu.memory_space<vmem>>, %arg7: memref<16x96xf32, #tpu.memory_space<vmem>>) attributes {dimension_semantics = [#tpu.dimension_semantics<parallel>, #tpu.dimension_semantics<parallel>, #tpu.dimension_semantics<arbitrary>], iteration_bounds = array<i64: 1, 1, 1>, scalar_prefetch = 0 : i64, scratch_operands = 1 : i64, tpu.core_type = #tpu.core_type<tc>, window_params = [{transform_indices = @transform_0, window_bounds = array<i64: 16, 32>}, {transform_indices = @transform_1, window_bounds = array<i64: 32, 96>}, {transform_indices = @transform_2, window_bounds = array<i64: 1, 96>}, {transform_indices = @transform_3, window_bounds = array<i64: 16, 96>}]} {
    %c0_i32 = arith.constant 0 : i32
    %0 = arith.cmpi eq, %arg2, %c0_i32 : i32
    %1 = arith.extui %0 : i1 to i32
    %c0_i32_0 = arith.constant 0 : i32
    %2 = arith.cmpi ne, %1, %c0_i32_0 : i32
    scf.if %2 {
      %cst_10 = arith.constant 0.000000e+00 : f32
      %12 = vector.broadcast %cst_10 : f32 to vector<16x96xf32>
      %c0_11 = arith.constant 0 : index
      %c0_12 = arith.constant 0 : index
      %13 = vector.load %arg7[%c0_11, %c0_12] : memref<16x96xf32, #tpu.memory_space<vmem>>, vector<16x96xf32>
      tpu.vector_store %arg7[%c0_11, %c0_12], %12 {strides = array<i32>} : memref<16x96xf32, #tpu.memory_space<vmem>>, vector<16x96xf32>,
    } else {
    }
    %c0 = arith.constant 0 : index
    %c0_1 = arith.constant 0 : index
    %3 = vector.load %arg7[%c0, %c0_1] : memref<16x96xf32, #tpu.memory_space<vmem>>, vector<16x96xf32>
    %c0_2 = arith.constant 0 : index
    %c0_3 = arith.constant 0 : index
    %4 = vector.load %arg3[%c0_2, %c0_3] : memref<16x32xf32, #tpu.memory_space<vmem>>, vector<16x32xf32>
    %c0_4 = arith.constant 0 : index
    %c0_5 = arith.constant 0 : index
    %5 = vector.load %arg4[%c0_4, %c0_5] : memref<32x96xf32, #tpu.memory_space<vmem>>, vector<32x96xf32>
    %cst = arith.constant dense<0.000000e+00> : vector<16x96xf32>
    %6 = tpu.matmul %4, %5, %cst {dimension_numbers = #tpu.dot_dimension_numbers<[1], [0], [0], [1], [0, 0, 1, 1], [], []>} : vector<16x32xf32>, vector<32x96xf32>, vector<16x96xf32> -> vector<16x96xf32>
    %7 = arith.addf %3, %6 : vector<16x96xf32>
    %c0_6 = arith.constant 0 : index
    %c0_7 = arith.constant 0 : index
    %8 = vector.load %arg7[%c0_6, %c0_7] : memref<16x96xf32, #tpu.memory_space<vmem>>, vector<16x96xf32>
    tpu.vector_store %arg7[%c0_6, %c0_7], %7 {strides = array<i32>} : memref<16x96xf32, #tpu.memory_space<vmem>>, vector<16x96xf32>,
    %c0_i32_8 = arith.constant 0 : i32
    %9 = arith.cmpi eq, %arg2, %c0_i32_8 : i32
    %10 = arith.extui %9 : i1 to i32
    %c0_i32_9 = arith.constant 0 : i32
    %11 = arith.cmpi ne, %10, %c0_i32_9 : i32
    scf.if %11 {
      %c0_10 = arith.constant 0 : index
      %c0_11 = arith.constant 0 : index
      %12 = vector.load %arg7[%c0_10, %c0_11] : memref<16x96xf32, #tpu.memory_space<vmem>>, vector<16x96xf32>
      %c0_12 = arith.constant 0 : index
      %c0_13 = arith.constant 0 : index
      %13 = vector.load %arg5[%c0_12, %c0_13] : memref<1x96xf32, #tpu.memory_space<vmem>>, vector<1x96xf32>
      %14 = vector.broadcast %13 : vector<1x96xf32> to vector<16x96xf32>
      %15 = arith.addf %12, %14 : vector<16x96xf32>
      %c0_14 = arith.constant 0 : index
      %c0_15 = arith.constant 0 : index
      %16 = vector.load %arg6[%c0_14, %c0_15] : memref<16x96xf32, #tpu.memory_space<vmem>>, vector<16x96xf32>
      tpu.vector_store %arg6[%c0_14, %c0_15], %15 {strides = array<i32>} : memref<16x96xf32, #tpu.memory_space<vmem>>, vector<16x96xf32>,
    } else {
    }
    return
  }
  func.func @transform_0(%arg0: i32, %arg1: i32, %arg2: i32) -> (i32, i32) {
    %c0_i32 = arith.constant 0 : i32
    return %arg0, %arg2 : i32, i32
  }
  func.func @transform_1(%arg0: i32, %arg1: i32, %arg2: i32) -> (i32, i32) {
    %c0_i32 = arith.constant 0 : i32
    return %arg2, %arg1 : i32, i32
  }
  func.func @transform_2(%arg0: i32, %arg1: i32, %arg2: i32) -> (i32, i32) {
    %c0_i32 = arith.constant 0 : i32
    %c0_i32_0 = arith.constant 0 : i32
    return %c0_i32, %arg1 : i32, i32
  }
  func.func @transform_3(%arg0: i32, %arg1: i32, %arg2: i32) -> (i32, i32) {
    %c0_i32 = arith.constant 0 : i32
    return %arg0, %arg1 : i32, i32
  }
}

</mosaic_0001>

<bundles_post_ra>
// kernel: tpu_custom_call.1
= control target key start
LH: loop header
LB: loop body
LE: loop exit
PB: predicated region body
PF: predicated region fallthrough
CT: control target
= control target key end

     0   :  { %8 = vsyncpa [#allocation4], 0  ;;  %s274_s0 = inlined_call_operand.hbm [shape: f32[16,32], index: 0, kind: input, shape index: {}]   ;;  %s275_s1 = inlined_call_operand.hbm [shape: f32[32,96], index: 1, kind: input, shape index: {}]   ;;  %s276_s2 = inlined_call_operand.vmem [shape: f32[1,96], index: 2, kind: input, shape index: {}]   ;;  %s277_s3 = inlined_call_operand.hbm [shape: f32[16,96], index: 3, kind: output, shape index: {}]  }
   0x1   :  { %9 = vsyncpa [#allocation7], 0 }
   0x2   :  { %10 = vsyncpa [#allocation5], 0  ;;  %s15_s14 = sshll.u32 %s274_s0, 4  ;;  %s221_s15 = smov [#allocation3]   ;;  %s16_s14 = int_to_ptr.hbm [resolvable:$true] %s15_s14 }
   0x3   :  { %s17_s16 = sshll.u32 %s221_s15, 4  ;;  %s28_s19 = sshll.u32 %s275_s1, 4  ;;  %s18_s16 = int_to_ptr.vmem [resolvable:$true] %s17_s16  ;;  %s29_s19 = int_to_ptr.hbm [resolvable:$true] %s28_s19 }
   0x4   :  { %s222_s20 = smov 128   ;;  %s223_s21 = smov 8  }
   0x5   :  { %23 = dma.hbm_to_vmem [thread:$0]  %s16_s14, 256, %s18_s16, [#allocation4], %s222_s20, %s222_s20, %s223_s21  }
   0x6   :  { %s224_s22 = smov [#allocation6]  }
   0x7   :  { %s30_s23 = sshll.u32 %s224_s22, 4  ;;  %s31_s23 = int_to_ptr.vmem [resolvable:$true] %s30_s23 }
   0x8   :  { %36 = dma.hbm_to_vmem [thread:$0]  %s29_s19, 512, %s31_s23, [#allocation7], %s222_s20, %s222_s20, %s223_s21  }
   0x9   :  { %215 = dma.done.wait [#allocation4], 256  }
   0xa   :  { %216 = vsyncadd [#allocation4], 4294967040 }
   0xb   :  { %217 = dma.done.wait [#allocation7], 512  }
   0xc   :  { %218 = vsyncadd [#allocation7], 4294966784  ;;  %vm51_vm0 = vcmask 785408   ;;  %v225_v0 = vmov 0.0   ;;  %v61_v1 = vld [vmem:[#allocation6 + $0x18] sm:$0xff]  ;;  %v60_v2 = vld [vmem:[#allocation6 + $0x10] sm:$0xff] }
   0xd   :  { %52 = vst.msk [vmem:[#allocation2] sm:$0xff] %vm51_vm0, %v225_v0  ;;  %81 = vmatpush.msra.mxu0 %v61_v1  ;;  %132 = vmatpush.msra.mxu1 %v61_v1  ;;  %v59_v3 = vld [vmem:[#allocation6 + $0x8] sm:$0xff]  ;;  %v58_v4 = vld [vmem:[#allocation6] sm:$0xff]  ;;  %v56_v5 = vld [vmem:[#allocation3] sm:$0xff]  ;;  %vm62_vm1 = vcmask 261120   ;;  %s226_s24 = smov [#allocation8]  }
   0xe   :  { %53 = vst.msk [vmem:[#allocation2 + $0x8] sm:$0xff] %vm51_vm0, %v225_v0  ;;  %v57_v6 = vld [vmem:[#allocation3 + $0x8] sm:$0xff]  ;;  %v142_v13 = vld [vmem:[%s276_s2] ss:$0 sm:$0xff]  ;;  %s114_s25 = sshll.u32 %s226_s24, 4  ;;  %s116_s28 = sshll.u32 %s277_s3, 4  ;;  %s115_s25 = int_to_ptr.vmem [resolvable:$true] %s114_s25  ;;  %s117_s28 = int_to_ptr.hbm [resolvable:$true] %s116_s28 }
   0xf   :  { %82 = vmatpush.msra.mxu0 %v60_v2  ;;  %133 = vmatpush.msra.mxu1 %v60_v2 }
  0x11   :  { %83 = vmatpush.msra.mxu0 %v59_v3  ;;  %134 = vmatpush.msra.mxu1 %v59_v3 }
  0x13   :  { %84 = vmatpush.msra.mxu0 %v58_v4  ;;  %135 = vmatpush.msra.mxu1 %v58_v4 }
  0x14   :  { %130 = vmatmul.msk.f32.vlgmr.msra.gmra.mxu0 %vm62_vm1, %v56_v5  ;;  %131 = vmatmul.msk.f32.vlgmr.msra.gmra.mxu1 %vm62_vm1, %v57_v6  ;;  %v54_v7 = vld [vmem:[#allocation2] sm:$0xff] }
  0x15   :  { %v55_v8 = vld [vmem:[#allocation2 + $0x8] sm:$0xff] }
  0x91   :  { %v86_v9 = vpop.f32.mrf.mxu0  ;;  %v89_v10 = vpop.f32.mrf.mxu1 }
  0x92   :  { %v92_v11 = vadd.f32 %v86_v9, %v54_v7  ;;  %v93_v12 = vadd.f32 %v89_v10, %v55_v8 }
  0x94   :  { %95 = vst.msk [vmem:[#allocation2] sm:$0xff] %vm51_vm0, %v92_v11 }
  0x95   :  { %96 = vst.msk [vmem:[#allocation2 + $0x8] sm:$0xff] %vm51_vm0, %v93_v12 }
  0x9b   :  { %v100_v14 = vld [vmem:[#allocation2] sm:$0xff] }
  0x9c   :  { %v101_v15 = vld [vmem:[#allocation2 + $0x8] sm:$0xff]  ;;  %v106_v16 = vadd.f32 %v142_v13, %v100_v14 }
  0x9d   :  { %v107_v17 = vadd.f32 %v142_v13, %v101_v15 }
  0x9e   :  { %108 = vst.msk [vmem:[#allocation8] sm:$0xff] %vm51_vm0, %v106_v16 }
  0x9f   :  { %109 = vst.msk [vmem:[#allocation8 + $0x8] sm:$0xff] %vm51_vm0, %v107_v17 }
  0xa0   :  { %122 = dma.vmem_to_hbm [thread:$0]  %s115_s25, 256, %s117_s28, [#allocation5], %s222_s20, %s222_s20, %s223_s21  }
  0xa1   :  { %219 = dma.done.wait [#allocation5], 256  }
  0xa2   :  { %220 = vsyncadd [#allocation5], 4294967040 }
  0xa3   :  { %127 = vsyncpa [#allocation4], 1 }
  0xa4   :  { %128 = vsyncpa [#allocation7], 1 }
  0xa5   :  { %129 = vsyncpa [#allocation5], 1 }

</bundles_post_ra>
